<compile_context>
chip_gen: v7x
topology: tpu7x:2x2x1
jax: 0.10.0
libtpu: 0.0.40
codegen_flags: <defaults>
</compile_context>

<pallas_src>
import functools
import math

import jax
import jax.numpy as jnp
from jax import lax
from jax.experimental import pallas as pl
from jax.experimental.pallas import tpu as pltpu

_EPS = 1e-5
_C_PAD = 8   # every channel group padded to one f32 sublane group


# ------------------------------ fused kernel ------------------------------- #

def _fused_group_kernel(x_ref, mask_ref, vec_ref, wts_ref, o_ref, patch_ref,
                        *, W, KH, KW, num_blocks):
    """Whole PreResidualGroup forward in one invocation; all state in VMEM.

    Layout: activations are (C_PAD=8, M) with M = N*H*W on the 128-lane axis.
    vec_ref  : (n_vec*8, 1)  per-channel columns   [s1,t1,s2,t2,s3,t3,bfin]/blk
    wts_ref  : (n_mat*8, 72) weight matrices       [w1,w2,w3(,ws)]/blk
    mask_ref : (KH*KW*8, M)  zero-padding tap masks, pre-broadcast to 8 rows
    patch_ref: (KH*KW*8, M)  VMEM im2col scratch
    """
    C = _C_PAD
    M = x_ref.shape[1]
    KK = KH * KW
    f32 = jnp.float32
    ch, cw = (KH - 1) // 2, (KW - 1) // 2
    tap_shift = [(kh - ch) * W + (kw - cw) for kh in range(KH) for kw in range(KW)]
    t_center = ch * KW + cw

    def vec(slot):                               # (8, 1) per-channel column
        off = slot * C
        return vec_ref[off:off + C, :]

    def bn_relu(a, vslot):                       # folded inference BN + ReLU (VPU)
        return jnp.maximum(a * vec(vslot) + vec(vslot + 1), 0.0)

    def conv1x1(a, wslot):                       # (8, 8) @ (8, M)
        off = wslot * C
        return jnp.dot(wts_ref[off:off + C, :C], a, preferred_element_type=f32)

    def convkxk(a, wslot):
        # im2col via lane rolls (XLU); each tap store is one aligned
        # 8-sublane group -> unmasked vst.  Center tap: no roll, no mask.
        for t in range(KK):
            if t == t_center:
                patch_ref[t * C:(t + 1) * C, :] = a
            else:
                rolled = pltpu.roll(a, shift=(-tap_shift[t]) % M, axis=1)
                patch_ref[t * C:(t + 1) * C, :] = (
                    rolled * mask_ref[t * C:(t + 1) * C, :])
        off = wslot * C
        return jnp.dot(wts_ref[off:off + C, :], patch_ref[...],
                       preferred_element_type=f32)

    x = x_ref[...]
    vslot, wslot = 0, 0
    for blk in range(num_blocks):
        h = bn_relu(x, vslot + 0)
        h = conv1x1(h, wslot + 0)
        h = bn_relu(h, vslot + 2)
        h = convkxk(h, wslot + 1)
        h = bn_relu(h, vslot + 4)
        h = convkxk(h, wslot + 2)
        h = h + vec(vslot + 6)                   # conv3 bias (+ shortcut bias, blk 0)
        if blk == 0:
            shortcut = conv1x1(x, wslot + 3)     # raw pre-BN input (stride handled
            wslot += 4                           # by the host-side subsample)
        else:
            shortcut = x
            wslot += 3
        vslot += 7
        x = h + shortcut
    o_ref[...] = x


# -------------------- one-time host-side folding / packing ------------------ #

def _fold_bn(bn):
    s = bn["gamma"] / jnp.sqrt(bn["var"] + _EPS)
    return s, bn["beta"] - bn["mean"] * s


def pack_group_params(params, kernel_size):
    """Fold BN / biases and pack all parameters into just two operands.

    Runs ONCE at build time — never inside the per-step jitted forward."""
    kh, kw = kernel_size
    C = _C_PAD
    KK = kh * kw
    blocks = params["blocks"]

    def padvec(v):
        return jnp.pad(v.astype(jnp.float32), (0, C - v.shape[0]))

    def pack_1x1(conv):
        w = conv["w"][0, 0]                                   # (cin, cout)
        cin, cout = w.shape
        wt = jnp.zeros((C, KK * C), jnp.float32)
        return wt.at[:cout, :cin].set(w.T)

    def pack_kxk(conv):
        w = conv["w"]                                         # (kh, kw, cin, cout)
        cin, cout = w.shape[2], w.shape[3]
        wp = jnp.zeros((kh, kw, C, cout), jnp.float32).at[:, :, :cin, :].set(w)
        wt = jnp.transpose(wp, (3, 0, 1, 2)).reshape(cout, KK * C)
        return jnp.pad(wt, ((0, C - cout), (0, 0)))

    vec_rows, wt_rows = [], []
    for i, blk in enumerate(blocks):
        s1, t1 = _fold_bn(blk["bn1"])
        s2, t2 = _fold_bn(blk["bn2"])
        s3, t3 = _fold_bn(blk["bn3"])
        t2 = t2 + s2 * blk["conv1"]["b"]       # fold conv1 bias into bn2 shift
        t3 = t3 + s3 * blk["conv2"]["b"]       # fold conv2 bias into bn3 shift
        bfin = blk["conv3"]["b"]
        if i == 0:
            bfin = bfin + blk["short"]["b"]    # merge shortcut bias into final bias
        vec_rows += [padvec(v) for v in (s1, t1, s2, t2, s3, t3, bfin)]
        wt_rows += [pack_1x1(blk["conv1"]), pack_kxk(blk["conv2"]),
                    pack_kxk(blk["conv3"])]
        if i == 0:
            wt_rows.append(pack_1x1(blk["short"]))

    vecs = jnp.concatenate(vec_rows).reshape(-1, 1)           # (7*nb*8, 1)
    wts = jnp.concatenate(wt_rows, axis=0)                    # (nmat*8, 9*8)
    return vecs, wts


def _make_tap_masks(n, h, w, kh, kw, c_pad):
    """Zero-padding masks per tap, pre-broadcast to c_pad sublanes."""
    ii, jj = jnp.meshgrid(jnp.arange(h), jnp.arange(w), indexing="ij")
    rows = []
    for dkh in range(kh):
        for dkw in range(kw):
            di = dkh - (kh - 1) // 2
            dj = dkw - (kw - 1) // 2
            ok = ((ii + di >= 0) & (ii + di < h) &
                  (jj + dj >= 0) & (jj + dj < w)).astype(jnp.float32)
            rows.append(jnp.broadcast_to(ok, (n, h, w)).reshape(n * h * w))
    m9 = jnp.stack(rows, axis=0)                              # (kh*kw, M)
    return jnp.repeat(m9, c_pad, axis=0)                      # (kh*kw*8, M)


# ------------------------------ jitted forward ------------------------------ #

def _forward_impl(x_nchw, vecs, wts, masks, *, c_in, f3, ho, wo, kh, kw,
                  sh, sw, num_blocks, cost):
    n = x_nchw.shape[0]
    m = n * ho * wo
    # Block 0's stride-s 1x1 convs (conv1 + shortcut) only read strided pixels
    # and BN/ReLU is elementwise -> subsample once; the kernel never sees the
    # full-res image.  (C, M) is lane-dense: M = N*Ho*Wo sits on the lane axis.
    xs = x_nchw[:, :, ::sh, ::sw]
    x_t = jnp.transpose(xs, (1, 0, 2, 3)).reshape(c_in, m)
    x_t = jnp.pad(x_t, ((0, _C_PAD - c_in), (0, 0)))

    kernel = functools.partial(_fused_group_kernel, W=wo, KH=kh, KW=kw,
                               num_blocks=num_blocks)
    n_in = 4
    out_t = pl.pallas_call(
        kernel,
        out_shape=jax.ShapeDtypeStruct((_C_PAD, m), jnp.float32),
        scratch_shapes=[pltpu.VMEM((kh * kw * _C_PAD, m), jnp.float32)],
        compiler_params=pltpu.CompilerParams(
            # let XLA fuse the subsample/transpose/pad producer into operand 0
            allow_input_fusion=[True] + [False] * (n_in - 1)),
        cost_estimate=cost,
    )(x_t, masks, vecs, wts)

    # (f3, N*Ho*Wo) -> NCHW (matches PyTorch).  When chaining several groups,
    # keep the (C, M) layout between them instead of transposing back.
    return jnp.transpose(out_t[:f3].reshape(f3, n, ho, wo), (1, 0, 2, 3))


def build_pre_residual_group(params, x_shape, kernel_size, strides):
    """One-time setup: fold + pack params, build masks, jit the forward."""
    n, c_in, h, w = x_shape
    sh, sw = strides
    kh, kw = kernel_size
    ho, wo = -(-h // sh), -(-w // sw)
    m = n * ho * wo
    blocks = params["blocks"]
    f3 = blocks[-1]["conv3"]["w"].shape[-1]

    vecs, wts = pack_group_params(params, kernel_size)
    masks = _make_tap_masks(n, ho, wo, kh, kw, _C_PAD)

    # advisory cost: padded-shape matmul flops + operand/result bytes
    mm = 0
    for i in range(len(blocks)):
        mm += _C_PAD * _C_PAD + 2 * _C_PAD * (kh * kw * _C_PAD)
        if i == 0:
            mm += _C_PAD * _C_PAD
    cost = pl.CostEstimate(
        flops=2 * mm * m, transcendentals=0,
        bytes_accessed=4 * (2 * _C_PAD * m + masks.size + vecs.size + wts.size))

    fwd = jax.jit(functools.partial(
        _forward_impl, c_in=c_in, f3=f3, ho=ho, wo=wo, kh=kh, kw=kw,
        sh=sh, sw=sw, num_blocks=len(blocks), cost=cost))

    def apply(x_nchw):
        return fwd(x_nchw, vecs, wts, masks)

    return apply


# --------------------------- pure-JAX reference ----------------------------- #

def _conv_ref(x, conv, stride, pad):
    y = lax.conv_general_dilated(
        x, conv["w"], window_strides=stride, padding=pad,
        dimension_numbers=("NHWC", "HWIO", "NHWC"),
        precision=lax.Precision.HIGHEST)
    return y + conv["b"]


def _bn_act_ref(x, bn):
    y = (x - bn["mean"]) / jnp.sqrt(bn["var"] + _EPS) * bn["gamma"] + bn["beta"]
    return jnp.maximum(y, 0.0)


def reference_forward(x_nchw, params, strides):
    x = jnp.transpose(x_nchw, (0, 2, 3, 1))
    for i, p in enumerate(params["blocks"]):
        kh, kw = p["conv2"]["w"].shape[:2]
        same = [((kh - 1) // 2,) * 2, ((kw - 1) // 2,) * 2]
        st = strides if i == 0 else (1, 1)
        h = _bn_act_ref(x, p["bn1"])
        h = _conv_ref(h, p["conv1"], st, [(0, 0), (0, 0)])
        h = _bn_act_ref(h, p["bn2"])
        h = _conv_ref(h, p["conv2"], (1, 1), same)
        h = _bn_act_ref(h, p["bn3"])
        h = _conv_ref(h, p["conv3"], (1, 1), same)
        if i == 0:
            x = h + _conv_ref(x, p["short"], st, [(0, 0), (0, 0)])
        else:
            x = h + x
    return jnp.transpose(x, (0, 3, 1, 2))


# ----------------------------- parameter init ------------------------------ #

def _init_bn(key, c):
    k1, k2, k3, k4 = jax.random.split(key, 4)
    return dict(
        gamma=1.0 + 0.1 * jax.random.normal(k1, (c,), jnp.float32),
        beta=0.1 * jax.random.normal(k2, (c,), jnp.float32),
        mean=0.1 * jax.random.normal(k3, (c,), jnp.float32),
        var=jax.random.uniform(k4, (c,), jnp.float32, 0.5, 1.5),
    )


def _init_conv(key, kh, kw, cin, cout):
    k1, k2 = jax.random.split(key)
    w = jax.random.normal(k1, (kh, kw, cin, cout), jnp.float32) / math.sqrt(kh * kw * cin)
    b = 0.05 * jax.random.normal(k2, (cout,), jnp.float32)
    return dict(w=w, b=b)


def init_params(key, num_blocks, in_c, num_filters, kernel_size):
    f1, f2, f3 = num_filters
    kh, kw = kernel_size
    blocks = []
    c_in = in_c
    for i in range(num_blocks):
        key, *ks = jax.random.split(key, 8)
        blk = dict(
            bn1=_init_bn(ks[0], c_in),
            conv1=_init_conv(ks[1], 1, 1, c_in, f1),
            bn2=_init_bn(ks[2], f1),
            conv2=_init_conv(ks[3], kh, kw, f1, f2),
            bn3=_init_bn(ks[4], f2),
            conv3=_init_conv(ks[5], kh, kw, f2, f3),
        )
        if i == 0:
            blk["short"] = _init_conv(ks[6], 1, 1, c_in, f3)
        blocks.append(blk)
        c_in = f3
    return dict(blocks=blocks)


# ---------------------------------- main ------------------------------------ #

if __name__ == "__main__":
    key = jax.random.PRNGKey(0)
    kx, kp = jax.random.split(key)

    N, C, H, W = 2, 4, 16, 16
    num_blocks = 2
    num_filters = (4, 4, 8)
    kernel_size = (3, 3)
    strides = (2, 2)

    x = jax.random.normal(kx, (N, C, H, W), jnp.float32)       # NCHW, like PyTorch
    params = init_params(kp, num_blocks, C, num_filters, kernel_size)

    # One-time fold/pack + jit (kept OUT of the per-step forward).
    group = build_pre_residual_group(params, x.shape, kernel_size, strides)

    out = jax.block_until_ready(group(x))
    ref = jax.block_until_ready(reference_forward(x, params, strides))

    assert out.shape == (N, num_filters[2], H // strides[0], W // strides[1]), out.shape
    max_err = float(jnp.max(jnp.abs(out - ref)))
    assert max_err < 1e-2, f"max abs error too large: {max_err}"
    print("KERNEL_OK")
</pallas_src>

<mosaic_0001>
module attributes {stable_mosaic.version = 11 : i64} {
  func.func @_fused_group_kernel(%arg0: memref<8x128xf32, #tpu.memory_space<vmem>>, %arg1: memref<72x128xf32, #tpu.memory_space<vmem>>, %arg2: memref<112x1xf32, #tpu.memory_space<vmem>>, %arg3: memref<56x72xf32, #tpu.memory_space<vmem>>, %arg4: memref<8x128xf32, #tpu.memory_space<vmem>>, %arg5: memref<72x128xf32, #tpu.memory_space<vmem>>) attributes {dimension_semantics = [], scalar_prefetch = 0 : i64, scratch_operands = 1 : i64, tpu.core_type = #tpu.core_type<tc>} {
    %c0 = arith.constant 0 : index
    %c0_0 = arith.constant 0 : index
    %0 = vector.load %arg0[%c0, %c0_0] : memref<8x128xf32, #tpu.memory_space<vmem>>, vector<8x128xf32>
    %c0_1 = arith.constant 0 : index
    %c0_2 = arith.constant 0 : index
    %1 = vector.load %arg2[%c0_1, %c0_2] : memref<112x1xf32, #tpu.memory_space<vmem>>, vector<8x1xf32>
    %2 = vector.broadcast %1 : vector<8x1xf32> to vector<8x128xf32>
    %3 = arith.mulf %0, %2 : vector<8x128xf32>
    %c8 = arith.constant 8 : index
    %c0_3 = arith.constant 0 : index
    %4 = vector.load %arg2[%c8, %c0_3] : memref<112x1xf32, #tpu.memory_space<vmem>>, vector<8x1xf32>
    %5 = vector.broadcast %4 : vector<8x1xf32> to vector<8x128xf32>
    %6 = arith.addf %3, %5 : vector<8x128xf32>
    %cst = arith.constant 0.000000e+00 : f32
    %7 = vector.broadcast %cst : f32 to vector<8x128xf32>
    %8 = arith.maximumf %6, %7 : vector<8x128xf32>
    %c0_4 = arith.constant 0 : index
    %c0_5 = arith.constant 0 : index
    %9 = vector.load %arg3[%c0_4, %c0_5] : memref<56x72xf32, #tpu.memory_space<vmem>>, vector<8x8xf32>
    %cst_6 = arith.constant dense<0.000000e+00> : vector<8x128xf32>
    %10 = tpu.matmul %9, %8, %cst_6 {dimension_numbers = #tpu.dot_dimension_numbers<[1], [0], [0], [1], [0, 0, 1, 1], [], []>} : vector<8x8xf32>, vector<8x128xf32>, vector<8x128xf32> -> vector<8x128xf32>
    %c16 = arith.constant 16 : index
    %c0_7 = arith.constant 0 : index
    %11 = vector.load %arg2[%c16, %c0_7] : memref<112x1xf32, #tpu.memory_space<vmem>>, vector<8x1xf32>
    %12 = vector.broadcast %11 : vector<8x1xf32> to vector<8x128xf32>
    %13 = arith.mulf %10, %12 : vector<8x128xf32>
    %c24 = arith.constant 24 : index
    %c0_8 = arith.constant 0 : index
    %14 = vector.load %arg2[%c24, %c0_8] : memref<112x1xf32, #tpu.memory_space<vmem>>, vector<8x1xf32>
    %15 = vector.broadcast %14 : vector<8x1xf32> to vector<8x128xf32>
    %16 = arith.addf %13, %15 : vector<8x128xf32>
    %cst_9 = arith.constant 0.000000e+00 : f32
    %17 = vector.broadcast %cst_9 : f32 to vector<8x128xf32>
    %18 = arith.maximumf %16, %17 : vector<8x128xf32>
    %c9_i32 = arith.constant 9 : i32
    %19 = tpu.dynamic_rotate %18 by %c9_i32 dim 1 : vector<8x128xf32>, i32 -> vector<8x128xf32>
    %c0_10 = arith.constant 0 : index
    %c0_11 = arith.constant 0 : index
    %20 = vector.load %arg1[%c0_10, %c0_11] : memref<72x128xf32, #tpu.memory_space<vmem>>, vector<8x128xf32>
    %21 = arith.mulf %19, %20 : vector<8x128xf32>
    %c0_12 = arith.constant 0 : index
    %c0_13 = arith.constant 0 : index
    %22 = vector.load %arg5[%c0_12, %c0_13] : memref<72x128xf32, #tpu.memory_space<vmem>>, vector<8x128xf32>
    tpu.vector_store %arg5[%c0_12, %c0_13], %21 {strides = array<i32>} : memref<72x128xf32, #tpu.memory_space<vmem>>, vector<8x128xf32>,
    %c8_i32 = arith.constant 8 : i32
    %23 = tpu.dynamic_rotate %18 by %c8_i32 dim 1 : vector<8x128xf32>, i32 -> vector<8x128xf32>
    %c8_14 = arith.constant 8 : index
    %c0_15 = arith.constant 0 : index
    %24 = vector.load %arg1[%c8_14, %c0_15] : memref<72x128xf32, #tpu.memory_space<vmem>>, vector<8x128xf32>
    %25 = arith.mulf %23, %24 : vector<8x128xf32>
    %c8_16 = arith.constant 8 : index
    %c0_17 = arith.constant 0 : index
    %26 = vector.load %arg5[%c8_16, %c0_17] : memref<72x128xf32, #tpu.memory_space<vmem>>, vector<8x128xf32>
    tpu.vector_store %arg5[%c8_16, %c0_17], %25 {strides = array<i32>} : memref<72x128xf32, #tpu.memory_space<vmem>>, vector<8x128xf32>,
    %c7_i32 = arith.constant 7 : i32
    %27 = tpu.dynamic_rotate %18 by %c7_i32 dim 1 : vector<8x128xf32>, i32 -> vector<8x128xf32>
    %c16_18 = arith.constant 16 : index
    %c0_19 = arith.constant 0 : index
    %28 = vector.load %arg1[%c16_18, %c0_19] : memref<72x128xf32, #tpu.memory_space<vmem>>, vector<8x128xf32>
    %29 = arith.mulf %27, %28 : vector<8x128xf32>
    %c16_20 = arith.constant 16 : index
    %c0_21 = arith.constant 0 : index
    %30 = vector.load %arg5[%c16_20, %c0_21] : memref<72x128xf32, #tpu.memory_space<vmem>>, vector<8x128xf32>
    tpu.vector_store %arg5[%c16_20, %c0_21], %29 {strides = array<i32>} : memref<72x128xf32, #tpu.memory_space<vmem>>, vector<8x128xf32>,
    %c1_i32 = arith.constant 1 : i32
    %31 = tpu.dynamic_rotate %18 by %c1_i32 dim 1 : vector<8x128xf32>, i32 -> vector<8x128xf32>
    %c24_22 = arith.constant 24 : index
    %c0_23 = arith.constant 0 : index
    %32 = vector.load %arg1[%c24_22, %c0_23] : memref<72x128xf32, #tpu.memory_space<vmem>>, vector<8x128xf32>
    %33 = arith.mulf %31, %32 : vector<8x128xf32>
    %c24_24 = arith.constant 24 : index
    %c0_25 = arith.constant 0 : index
    %34 = vector.load %arg5[%c24_24, %c0_25] : memref<72x128xf32, #tpu.memory_space<vmem>>, vector<8x128xf32>
    tpu.vector_store %arg5[%c24_24, %c0_25], %33 {strides = array<i32>} : memref<72x128xf32, #tpu.memory_space<vmem>>, vector<8x128xf32>,
    %c32 = arith.constant 32 : index
    %c0_26 = arith.constant 0 : index
    %35 = vector.load %arg5[%c32, %c0_26] : memref<72x128xf32, #tpu.memory_space<vmem>>, vector<8x128xf32>
    tpu.vector_store %arg5[%c32, %c0_26], %18 {strides = array<i32>} : memref<72x128xf32, #tpu.memory_space<vmem>>, vector<8x128xf32>,
    %c127_i32 = arith.constant 127 : i32
    %36 = tpu.dynamic_rotate %18 by %c127_i32 dim 1 : vector<8x128xf32>, i32 -> vector<8x128xf32>
    %c40 = arith.constant 40 : index
    %c0_27 = arith.constant 0 : index
    %37 = vector.load %arg1[%c40, %c0_27] : memref<72x128xf32, #tpu.memory_space<vmem>>, vector<8x128xf32>
    %38 = arith.mulf %36, %37 : vector<8x128xf32>
    %c40_28 = arith.constant 40 : index
    %c0_29 = arith.constant 0 : index
    %39 = vector.load %arg5[%c40_28, %c0_29] : memref<72x128xf32, #tpu.memory_space<vmem>>, vector<8x128xf32>
    tpu.vector_store %arg5[%c40_28, %c0_29], %38 {strides = array<i32>} : memref<72x128xf32, #tpu.memory_space<vmem>>, vector<8x128xf32>,
    %c121_i32 = arith.constant 121 : i32
    %40 = tpu.dynamic_rotate %18 by %c121_i32 dim 1 : vector<8x128xf32>, i32 -> vector<8x128xf32>
    %c48 = arith.constant 48 : index
    %c0_30 = arith.constant 0 : index
    %41 = vector.load %arg1[%c48, %c0_30] : memref<72x128xf32, #tpu.memory_space<vmem>>, vector<8x128xf32>
    %42 = arith.mulf %40, %41 : vector<8x128xf32>
    %c48_31 = arith.constant 48 : index
    %c0_32 = arith.constant 0 : index
    %43 = vector.load %arg5[%c48_31, %c0_32] : memref<72x128xf32, #tpu.memory_space<vmem>>, vector<8x128xf32>
    tpu.vector_store %arg5[%c48_31, %c0_32], %42 {strides = array<i32>} : memref<72x128xf32, #tpu.memory_space<vmem>>, vector<8x128xf32>,
    %c120_i32 = arith.constant 120 : i32
    %44 = tpu.dynamic_rotate %18 by %c120_i32 dim 1 : vector<8x128xf32>, i32 -> vector<8x128xf32>
    %c56 = arith.constant 56 : index
    %c0_33 = arith.constant 0 : index
    %45 = vector.load %arg1[%c56, %c0_33] : memref<72x128xf32, #tpu.memory_space<vmem>>, vector<8x128xf32>
    %46 = arith.mulf %44, %45 : vector<8x128xf32>
    %c56_34 = arith.constant 56 : index
    %c0_35 = arith.constant 0 : index
    %47 = vector.load %arg5[%c56_34, %c0_35] : memref<72x128xf32, #tpu.memory_space<vmem>>, vector<8x128xf32>
    tpu.vector_store %arg5[%c56_34, %c0_35], %46 {strides = array<i32>} : memref<72x128xf32, #tpu.memory_space<vmem>>, vector<8x128xf32>,
    %c119_i32 = arith.constant 119 : i32
    %48 = tpu.dynamic_rotate %18 by %c119_i32 dim 1 : vector<8x128xf32>, i32 -> vector<8x128xf32>
    %c64 = arith.constant 64 : index
    %c0_36 = arith.constant 0 : index
    %49 = vector.load %arg1[%c64, %c0_36] : memref<72x128xf32, #tpu.memory_space<vmem>>, vector<8x128xf32>
    %50 = arith.mulf %48, %49 : vector<8x128xf32>
    %c64_37 = arith.constant 64 : index
    %c0_38 = arith.constant 0 : index
    %51 = vector.load %arg5[%c64_37, %c0_38] : memref<72x128xf32, #tpu.memory_space<vmem>>, vector<8x128xf32>
    tpu.vector_store %arg5[%c64_37, %c0_38], %50 {strides = array<i32>} : memref<72x128xf32, #tpu.memory_space<vmem>>, vector<8x128xf32>,
    %c8_39 = arith.constant 8 : index
    %c0_40 = arith.constant 0 : index
    %52 = vector.load %arg3[%c8_39, %c0_40] : memref<56x72xf32, #tpu.memory_space<vmem>>, vector<8x72xf32>
    %c0_41 = arith.constant 0 : index
    %c0_42 = arith.constant 0 : index
    %53 = vector.load %arg5[%c0_41, %c0_42] : memref<72x128xf32, #tpu.memory_space<vmem>>, vector<72x128xf32>
    %cst_43 = arith.constant dense<0.000000e+00> : vector<8x128xf32>
    %54 = tpu.matmul %52, %53, %cst_43 {dimension_numbers = #tpu.dot_dimension_numbers<[1], [0], [0], [1], [0, 0, 1, 1], [], []>} : vector<8x72xf32>, vector<72x128xf32>, vector<8x128xf32> -> vector<8x128xf32>
    %c32_44 = arith.constant 32 : index
    %c0_45 = arith.constant 0 : index
    %55 = vector.load %arg2[%c32_44, %c0_45] : memref<112x1xf32, #tpu.memory_space<vmem>>, vector<8x1xf32>
    %56 = vector.broadcast %55 : vector<8x1xf32> to vector<8x128xf32>
    %57 = arith.mulf %54, %56 : vector<8x128xf32>
    %c40_46 = arith.constant 40 : index
    %c0_47 = arith.constant 0 : index
    %58 = vector.load %arg2[%c40_46, %c0_47] : memref<112x1xf32, #tpu.memory_space<vmem>>, vector<8x1xf32>
    %59 = vector.broadcast %58 : vector<8x1xf32> to vector<8x128xf32>
    %60 = arith.addf %57, %59 : vector<8x128xf32>
    %cst_48 = arith.constant 0.000000e+00 : f32
    %61 = vector.broadcast %cst_48 : f32 to vector<8x128xf32>
    %62 = arith.maximumf %60, %61 : vector<8x128xf32>
    %c9_i32_49 = arith.constant 9 : i32
    %63 = tpu.dynamic_rotate %62 by %c9_i32_49 dim 1 : vector<8x128xf32>, i32 -> vector<8x128xf32>
    %c0_50 = arith.constant 0 : index
    %c0_51 = arith.constant 0 : index
    %64 = vector.load %arg1[%c0_50, %c0_51] : memref<72x128xf32, #tpu.memory_space<vmem>>, vector<8x128xf32>
    %65 = arith.mulf %63, %64 : vector<8x128xf32>
    %c0_52 = arith.constant 0 : index
    %c0_53 = arith.constant 0 : index
    %66 = vector.load %arg5[%c0_52, %c0_53] : memref<72x128xf32, #tpu.memory_space<vmem>>, vector<8x128xf32>
    tpu.vector_store %arg5[%c0_52, %c0_53], %65 {strides = array<i32>} : memref<72x128xf32, #tpu.memory_space<vmem>>, vector<8x128xf32>,
    %c8_i32_54 = arith.constant 8 : i32
    %67 = tpu.dynamic_rotate %62 by %c8_i32_54 dim 1 : vector<8x128xf32>, i32 -> vector<8x128xf32>
    %c8_55 = arith.constant 8 : index
    %c0_56 = arith.constant 0 : index
    %68 = vector.load %arg1[%c8_55, %c0_56] : memref<72x128xf32, #tpu.memory_space<vmem>>, vector<8x128xf32>
    %69 = arith.mulf %67, %68 : vector<8x128xf32>
    %c8_57 = arith.constant 8 : index
    %c0_58 = arith.constant 0 : index
    %70 = vector.load %arg5[%c8_57, %c0_58] : memref<72x128xf32, #tpu.memory_space<vmem>>, vector<8x128xf32>
    tpu.vector_store %arg5[%c8_57, %c0_58], %69 {strides = array<i32>} : memref<72x128xf32, #tpu.memory_space<vmem>>, vector<8x128xf32>,
    %c7_i32_59 = arith.constant 7 : i32
    %71 = tpu.dynamic_rotate %62 by %c7_i32_59 dim 1 : vector<8x128xf32>, i32 -> vector<8x128xf32>
    %c16_60 = arith.constant 16 : index
    %c0_61 = arith.constant 0 : index
    %72 = vector.load %arg1[%c16_60, %c0_61] : memref<72x128xf32, #tpu.memory_space<vmem>>, vector<8x128xf32>
    %73 = arith.mulf %71, %72 : vector<8x128xf32>
    %c16_62 = arith.constant 16 : index
    %c0_63 = arith.constant 0 : index
    %74 = vector.load %arg5[%c16_62, %c0_63] : memref<72x128xf32, #tpu.memory_space<vmem>>, vector<8x128xf32>
    tpu.vector_store %arg5[%c16_62, %c0_63], %73 {strides = array<i32>} : memref<72x128xf32, #tpu.memory_space<vmem>>, vector<8x128xf32>,
    %c1_i32_64 = arith.constant 1 : i32
    %75 = tpu.dynamic_rotate %62 by %c1_i32_64 dim 1 : vector<8x128xf32>, i32 -> vector<8x128xf32>
    %c24_65 = arith.constant 24 : index
    %c0_66 = arith.constant 0 : index
    %76 = vector.load %arg1[%c24_65, %c0_66] : memref<72x128xf32, #tpu.memory_space<vmem>>, vector<8x128xf32>
    %77 = arith.mulf %75, %76 : vector<8x128xf32>
    %c24_67 = arith.constant 24 : index
    %c0_68 = arith.constant 0 : index
    %78 = vector.load %arg5[%c24_67, %c0_68] : memref<72x128xf32, #tpu.memory_space<vmem>>, vector<8x128xf32>
    tpu.vector_store %arg5[%c24_67, %c0_68], %77 {strides = array<i32>} : memref<72x128xf32, #tpu.memory_space<vmem>>, vector<8x128xf32>,
    %c32_69 = arith.constant 32 : index
    %c0_70 = arith.constant 0 : index
    %79 = vector.load %arg5[%c32_69, %c0_70] : memref<72x128xf32, #tpu.memory_space<vmem>>, vector<8x128xf32>
    tpu.vector_store %arg5[%c32_69, %c0_70], %62 {strides = array<i32>} : memref<72x128xf32, #tpu.memory_space<vmem>>, vector<8x128xf32>,
    %c127_i32_71 = arith.constant 127 : i32
    %80 = tpu.dynamic_rotate %62 by %c127_i32_71 dim 1 : vector<8x128xf32>, i32 -> vector<8x128xf32>
    %c40_72 = arith.constant 40 : index
    %c0_73 = arith.constant 0 : index
    %81 = vector.load %arg1[%c40_72, %c0_73] : memref<72x128xf32, #tpu.memory_space<vmem>>, vector<8x128xf32>
    %82 = arith.mulf %80, %81 : vector<8x128xf32>
    %c40_74 = arith.constant 40 : index
    %c0_75 = arith.constant 0 : index
    %83 = vector.load %arg5[%c40_74, %c0_75] : memref<72x128xf32, #tpu.memory_space<vmem>>, vector<8x128xf32>
    tpu.vector_store %arg5[%c40_74, %c0_75], %82 {strides = array<i32>} : memref<72x128xf32, #tpu.memory_space<vmem>>, vector<8x128xf32>,
    %c121_i32_76 = arith.constant 121 : i32
    %84 = tpu.dynamic_rotate %62 by %c121_i32_76 dim 1 : vector<8x128xf32>, i32 -> vector<8x128xf32>
    %c48_77 = arith.constant 48 : index
    %c0_78 = arith.constant 0 : index
    %85 = vector.load %arg1[%c48_77, %c0_78] : memref<72x128xf32, #tpu.memory_space<vmem>>, vector<8x128xf32>
    %86 = arith.mulf %84, %85 : vector<8x128xf32>
    %c48_79 = arith.constant 48 : index
    %c0_80 = arith.constant 0 : index
    %87 = vector.load %arg5[%c48_79, %c0_80] : memref<72x128xf32, #tpu.memory_space<vmem>>, vector<8x128xf32>
    tpu.vector_store %arg5[%c48_79, %c0_80], %86 {strides = array<i32>} : memref<72x128xf32, #tpu.memory_space<vmem>>, vector<8x128xf32>,
    %c120_i32_81 = arith.constant 120 : i32
    %88 = tpu.dynamic_rotate %62 by %c120_i32_81 dim 1 : vector<8x128xf32>, i32 -> vector<8x128xf32>
    %c56_82 = arith.constant 56 : index
    %c0_83 = arith.constant 0 : index
    %89 = vector.load %arg1[%c56_82, %c0_83] : memref<72x128xf32, #tpu.memory_space<vmem>>, vector<8x128xf32>
    %90 = arith.mulf %88, %89 : vector<8x128xf32>
    %c56_84 = arith.constant 56 : index
    %c0_85 = arith.constant 0 : index
    %91 = vector.load %arg5[%c56_84, %c0_85] : memref<72x128xf32, #tpu.memory_space<vmem>>, vector<8x128xf32>
    tpu.vector_store %arg5[%c56_84, %c0_85], %90 {strides = array<i32>} : memref<72x128xf32, #tpu.memory_space<vmem>>, vector<8x128xf32>,
    %c119_i32_86 = arith.constant 119 : i32
    %92 = tpu.dynamic_rotate %62 by %c119_i32_86 dim 1 : vector<8x128xf32>, i32 -> vector<8x128xf32>
    %c64_87 = arith.constant 64 : index
    %c0_88 = arith.constant 0 : index
    %93 = vector.load %arg1[%c64_87, %c0_88] : memref<72x128xf32, #tpu.memory_space<vmem>>, vector<8x128xf32>
    %94 = arith.mulf %92, %93 : vector<8x128xf32>
    %c64_89 = arith.constant 64 : index
    %c0_90 = arith.constant 0 : index
    %95 = vector.load %arg5[%c64_89, %c0_90] : memref<72x128xf32, #tpu.memory_space<vmem>>, vector<8x128xf32>
    tpu.vector_store %arg5[%c64_89, %c0_90], %94 {strides = array<i32>} : memref<72x128xf32, #tpu.memory_space<vmem>>, vector<8x128xf32>,
    %c16_91 = arith.constant 16 : index
    %c0_92 = arith.constant 0 : index
    %96 = vector.load %arg3[%c16_91, %c0_92] : memref<56x72xf32, #tpu.memory_space<vmem>>, vector<8x72xf32>
    %c0_93 = arith.constant 0 : index
    %c0_94 = arith.constant 0 : index
    %97 = vector.load %arg5[%c0_93, %c0_94] : memref<72x128xf32, #tpu.memory_space<vmem>>, vector<72x128xf32>
    %cst_95 = arith.constant dense<0.000000e+00> : vector<8x128xf32>
    %98 = tpu.matmul %96, %97, %cst_95 {dimension_numbers = #tpu.dot_dimension_numbers<[1], [0], [0], [1], [0, 0, 1, 1], [], []>} : vector<8x72xf32>, vector<72x128xf32>, vector<8x128xf32> -> vector<8x128xf32>
    %c48_96 = arith.constant 48 : index
    %c0_97 = arith.constant 0 : index
    %99 = vector.load %arg2[%c48_96, %c0_97] : memref<112x1xf32, #tpu.memory_space<vmem>>, vector<8x1xf32>
    %100 = vector.broadcast %99 : vector<8x1xf32> to vector<8x128xf32>
    %101 = arith.addf %98, %100 : vector<8x128xf32>
    %c24_98 = arith.constant 24 : index
    %c0_99 = arith.constant 0 : index
    %102 = vector.load %arg3[%c24_98, %c0_99] : memref<56x72xf32, #tpu.memory_space<vmem>>, vector<8x8xf32>
    %cst_100 = arith.constant dense<0.000000e+00> : vector<8x128xf32>
    %103 = tpu.matmul %102, %0, %cst_100 {dimension_numbers = #tpu.dot_dimension_numbers<[1], [0], [0], [1], [0, 0, 1, 1], [], []>} : vector<8x8xf32>, vector<8x128xf32>, vector<8x128xf32> -> vector<8x128xf32>
    %104 = arith.addf %101, %103 : vector<8x128xf32>
    %c56_101 = arith.constant 56 : index
    %c0_102 = arith.constant 0 : index
    %105 = vector.load %arg2[%c56_101, %c0_102] : memref<112x1xf32, #tpu.memory_space<vmem>>, vector<8x1xf32>
    %106 = vector.broadcast %105 : vector<8x1xf32> to vector<8x128xf32>
    %107 = arith.mulf %104, %106 : vector<8x128xf32>
    %c64_103 = arith.constant 64 : index
    %c0_104 = arith.constant 0 : index
    %108 = vector.load %arg2[%c64_103, %c0_104] : memref<112x1xf32, #tpu.memory_space<vmem>>, vector<8x1xf32>
    %109 = vector.broadcast %108 : vector<8x1xf32> to vector<8x128xf32>
    %110 = arith.addf %107, %109 : vector<8x128xf32>
    %cst_105 = arith.constant 0.000000e+00 : f32
    %111 = vector.broadcast %cst_105 : f32 to vector<8x128xf32>
    %112 = arith.maximumf %110, %111 : vector<8x128xf32>
    %c32_106 = arith.constant 32 : index
    %c0_107 = arith.constant 0 : index
    %113 = vector.load %arg3[%c32_106, %c0_107] : memref<56x72xf32, #tpu.memory_space<vmem>>, vector<8x8xf32>
    %cst_108 = arith.constant dense<0.000000e+00> : vector<8x128xf32>
    %114 = tpu.matmul %113, %112, %cst_108 {dimension_numbers = #tpu.dot_dimension_numbers<[1], [0], [0], [1], [0, 0, 1, 1], [], []>} : vector<8x8xf32>, vector<8x128xf32>, vector<8x128xf32> -> vector<8x128xf32>
    %c72 = arith.constant 72 : index
    %c0_109 = arith.constant 0 : index
    %115 = vector.load %arg2[%c72, %c0_109] : memref<112x1xf32, #tpu.memory_space<vmem>>, vector<8x1xf32>
    %116 = vector.broadcast %115 : vector<8x1xf32> to vector<8x128xf32>
    %117 = arith.mulf %114, %116 : vector<8x128xf32>
    %c80 = arith.constant 80 : index
    %c0_110 = arith.constant 0 : index
    %118 = vector.load %arg2[%c80, %c0_110] : memref<112x1xf32, #tpu.memory_space<vmem>>, vector<8x1xf32>
    %119 = vector.broadcast %118 : vector<8x1xf32> to vector<8x128xf32>
    %120 = arith.addf %117, %119 : vector<8x128xf32>
    %cst_111 = arith.constant 0.000000e+00 : f32
    %121 = vector.broadcast %cst_111 : f32 to vector<8x128xf32>
    %122 = arith.maximumf %120, %121 : vector<8x128xf32>
    %c9_i32_112 = arith.constant 9 : i32
    %123 = tpu.dynamic_rotate %122 by %c9_i32_112 dim 1 : vector<8x128xf32>, i32 -> vector<8x128xf32>
    %c0_113 = arith.constant 0 : index
    %c0_114 = arith.constant 0 : index
    %124 = vector.load %arg1[%c0_113, %c0_114] : memref<72x128xf32, #tpu.memory_space<vmem>>, vector<8x128xf32>
    %125 = arith.mulf %123, %124 : vector<8x128xf32>
    %c0_115 = arith.constant 0 : index
    %c0_116 = arith.constant 0 : index
    %126 = vector.load %arg5[%c0_115, %c0_116] : memref<72x128xf32, #tpu.memory_space<vmem>>, vector<8x128xf32>
    tpu.vector_store %arg5[%c0_115, %c0_116], %125 {strides = array<i32>} : memref<72x128xf32, #tpu.memory_space<vmem>>, vector<8x128xf32>,
    %c8_i32_117 = arith.constant 8 : i32
    %127 = tpu.dynamic_rotate %122 by %c8_i32_117 dim 1 : vector<8x128xf32>, i32 -> vector<8x128xf32>
    %c8_118 = arith.constant 8 : index
    %c0_119 = arith.constant 0 : index
    %128 = vector.load %arg1[%c8_118, %c0_119] : memref<72x128xf32, #tpu.memory_space<vmem>>, vector<8x128xf32>
    %129 = arith.mulf %127, %128 : vector<8x128xf32>
    %c8_120 = arith.constant 8 : index
    %c0_121 = arith.constant 0 : index
    %130 = vector.load %arg5[%c8_120, %c0_121] : memref<72x128xf32, #tpu.memory_space<vmem>>, vector<8x128xf32>
    tpu.vector_store %arg5[%c8_120, %c0_121], %129 {strides = array<i32>} : memref<72x128xf32, #tpu.memory_space<vmem>>, vector<8x128xf32>,
    %c7_i32_122 = arith.constant 7 : i32
    %131 = tpu.dynamic_rotate %122 by %c7_i32_122 dim 1 : vector<8x128xf32>, i32 -> vector<8x128xf32>
    %c16_123 = arith.constant 16 : index
    %c0_124 = arith.constant 0 : index
    %132 = vector.load %arg1[%c16_123, %c0_124] : memref<72x128xf32, #tpu.memory_space<vmem>>, vector<8x128xf32>
    %133 = arith.mulf %131, %132 : vector<8x128xf32>
    %c16_125 = arith.constant 16 : index
    %c0_126 = arith.constant 0 : index
    %134 = vector.load %arg5[%c16_125, %c0_126] : memref<72x128xf32, #tpu.memory_space<vmem>>, vector<8x128xf32>
    tpu.vector_store %arg5[%c16_125, %c0_126], %133 {strides = array<i32>} : memref<72x128xf32, #tpu.memory_space<vmem>>, vector<8x128xf32>,
    %c1_i32_127 = arith.constant 1 : i32
    %135 = tpu.dynamic_rotate %122 by %c1_i32_127 dim 1 : vector<8x128xf32>, i32 -> vector<8x128xf32>
    %c24_128 = arith.constant 24 : index
    %c0_129 = arith.constant 0 : index
    %136 = vector.load %arg1[%c24_128, %c0_129] : memref<72x128xf32, #tpu.memory_space<vmem>>, vector<8x128xf32>
    %137 = arith.mulf %135, %136 : vector<8x128xf32>
    %c24_130 = arith.constant 24 : index
    %c0_131 = arith.constant 0 : index
    %138 = vector.load %arg5[%c24_130, %c0_131] : memref<72x128xf32, #tpu.memory_space<vmem>>, vector<8x128xf32>
    tpu.vector_store %arg5[%c24_130, %c0_131], %137 {strides = array<i32>} : memref<72x128xf32, #tpu.memory_space<vmem>>, vector<8x128xf32>,
    %c32_132 = arith.constant 32 : index
    %c0_133 = arith.constant 0 : index
    %139 = vector.load %arg5[%c32_132, %c0_133] : memref<72x128xf32, #tpu.memory_space<vmem>>, vector<8x128xf32>
    tpu.vector_store %arg5[%c32_132, %c0_133], %122 {strides = array<i32>} : memref<72x128xf32, #tpu.memory_space<vmem>>, vector<8x128xf32>,
    %c127_i32_134 = arith.constant 127 : i32
    %140 = tpu.dynamic_rotate %122 by %c127_i32_134 dim 1 : vector<8x128xf32>, i32 -> vector<8x128xf32>
    %c40_135 = arith.constant 40 : index
    %c0_136 = arith.constant 0 : index
    %141 = vector.load %arg1[%c40_135, %c0_136] : memref<72x128xf32, #tpu.memory_space<vmem>>, vector<8x128xf32>
    %142 = arith.mulf %140, %141 : vector<8x128xf32>
    %c40_137 = arith.constant 40 : index
    %c0_138 = arith.constant 0 : index
    %143 = vector.load %arg5[%c40_137, %c0_138] : memref<72x128xf32, #tpu.memory_space<vmem>>, vector<8x128xf32>
    tpu.vector_store %arg5[%c40_137, %c0_138], %142 {strides = array<i32>} : memref<72x128xf32, #tpu.memory_space<vmem>>, vector<8x128xf32>,
    %c121_i32_139 = arith.constant 121 : i32
    %144 = tpu.dynamic_rotate %122 by %c121_i32_139 dim 1 : vector<8x128xf32>, i32 -> vector<8x128xf32>
    %c48_140 = arith.constant 48 : index
    %c0_141 = arith.constant 0 : index
    %145 = vector.load %arg1[%c48_140, %c0_141] : memref<72x128xf32, #tpu.memory_space<vmem>>, vector<8x128xf32>
    %146 = arith.mulf %144, %145 : vector<8x128xf32>
    %c48_142 = arith.constant 48 : index
    %c0_143 = arith.constant 0 : index
    %147 = vector.load %arg5[%c48_142, %c0_143] : memref<72x128xf32, #tpu.memory_space<vmem>>, vector<8x128xf32>
    tpu.vector_store %arg5[%c48_142, %c0_143], %146 {strides = array<i32>} : memref<72x128xf32, #tpu.memory_space<vmem>>, vector<8x128xf32>,
    %c120_i32_144 = arith.constant 120 : i32
    %148 = tpu.dynamic_rotate %122 by %c120_i32_144 dim 1 : vector<8x128xf32>, i32 -> vector<8x128xf32>
    %c56_145 = arith.constant 56 : index
    %c0_146 = arith.constant 0 : index
    %149 = vector.load %arg1[%c56_145, %c0_146] : memref<72x128xf32, #tpu.memory_space<vmem>>, vector<8x128xf32>
    %150 = arith.mulf %148, %149 : vector<8x128xf32>
    %c56_147 = arith.constant 56 : index
    %c0_148 = arith.constant 0 : index
    %151 = vector.load %arg5[%c56_147, %c0_148] : memref<72x128xf32, #tpu.memory_space<vmem>>, vector<8x128xf32>
    tpu.vector_store %arg5[%c56_147, %c0_148], %150 {strides = array<i32>} : memref<72x128xf32, #tpu.memory_space<vmem>>, vector<8x128xf32>,
    %c119_i32_149 = arith.constant 119 : i32
    %152 = tpu.dynamic_rotate %122 by %c119_i32_149 dim 1 : vector<8x128xf32>, i32 -> vector<8x128xf32>
    %c64_150 = arith.constant 64 : index
    %c0_151 = arith.constant 0 : index
    %153 = vector.load %arg1[%c64_150, %c0_151] : memref<72x128xf32, #tpu.memory_space<vmem>>, vector<8x128xf32>
    %154 = arith.mulf %152, %153 : vector<8x128xf32>
    %c64_152 = arith.constant 64 : index
    %c0_153 = arith.constant 0 : index
    %155 = vector.load %arg5[%c64_152, %c0_153] : memref<72x128xf32, #tpu.memory_space<vmem>>, vector<8x128xf32>
    tpu.vector_store %arg5[%c64_152, %c0_153], %154 {strides = array<i32>} : memref<72x128xf32, #tpu.memory_space<vmem>>, vector<8x128xf32>,
    %c40_154 = arith.constant 40 : index
    %c0_155 = arith.constant 0 : index
    %156 = vector.load %arg3[%c40_154, %c0_155] : memref<56x72xf32, #tpu.memory_space<vmem>>, vector<8x72xf32>
    %c0_156 = arith.constant 0 : index
    %c0_157 = arith.constant 0 : index
    %157 = vector.load %arg5[%c0_156, %c0_157] : memref<72x128xf32, #tpu.memory_space<vmem>>, vector<72x128xf32>
    %cst_158 = arith.constant dense<0.000000e+00> : vector<8x128xf32>
    %158 = tpu.matmul %156, %157, %cst_158 {dimension_numbers = #tpu.dot_dimension_numbers<[1], [0], [0], [1], [0, 0, 1, 1], [], []>} : vector<8x72xf32>, vector<72x128xf32>, vector<8x128xf32> -> vector<8x128xf32>
    %c88 = arith.constant 88 : index
    %c0_159 = arith.constant 0 : index
    %159 = vector.load %arg2[%c88, %c0_159] : memref<112x1xf32, #tpu.memory_space<vmem>>, vector<8x1xf32>
    %160 = vector.broadcast %159 : vector<8x1xf32> to vector<8x128xf32>
    %161 = arith.mulf %158, %160 : vector<8x128xf32>
    %c96 = arith.constant 96 : index
    %c0_160 = arith.constant 0 : index
    %162 = vector.load %arg2[%c96, %c0_160] : memref<112x1xf32, #tpu.memory_space<vmem>>, vector<8x1xf32>
    %163 = vector.broadcast %162 : vector<8x1xf32> to vector<8x128xf32>
    %164 = arith.addf %161, %163 : vector<8x128xf32>
    %cst_161 = arith.constant 0.000000e+00 : f32
    %165 = vector.broadcast %cst_161 : f32 to vector<8x128xf32>
    %166 = arith.maximumf %164, %165 : vector<8x128xf32>
    %c9_i32_162 = arith.constant 9 : i32
    %167 = tpu.dynamic_rotate %166 by %c9_i32_162 dim 1 : vector<8x128xf32>, i32 -> vector<8x128xf32>
    %c0_163 = arith.constant 0 : index
    %c0_164 = arith.constant 0 : index
    %168 = vector.load %arg1[%c0_163, %c0_164] : memref<72x128xf32, #tpu.memory_space<vmem>>, vector<8x128xf32>
    %169 = arith.mulf %167, %168 : vector<8x128xf32>
    %c0_165 = arith.constant 0 : index
    %c0_166 = arith.constant 0 : index
    %170 = vector.load %arg5[%c0_165, %c0_166] : memref<72x128xf32, #tpu.memory_space<vmem>>, vector<8x128xf32>
    tpu.vector_store %arg5[%c0_165, %c0_166], %169 {strides = array<i32>} : memref<72x128xf32, #tpu.memory_space<vmem>>, vector<8x128xf32>,
    %c8_i32_167 = arith.constant 8 : i32
    %171 = tpu.dynamic_rotate %166 by %c8_i32_167 dim 1 : vector<8x128xf32>, i32 -> vector<8x128xf32>
    %c8_168 = arith.constant 8 : index
    %c0_169 = arith.constant 0 : index
    %172 = vector.load %arg1[%c8_168, %c0_169] : memref<72x128xf32, #tpu.memory_space<vmem>>, vector<8x128xf32>
    %173 = arith.mulf %171, %172 : vector<8x128xf32>
    %c8_170 = arith.constant 8 : index
    %c0_171 = arith.constant 0 : index
    %174 = vector.load %arg5[%c8_170, %c0_171] : memref<72x128xf32, #tpu.memory_space<vmem>>, vector<8x128xf32>
    tpu.vector_store %arg5[%c8_170, %c0_171], %173 {strides = array<i32>} : memref<72x128xf32, #tpu.memory_space<vmem>>, vector<8x128xf32>,
    %c7_i32_172 = arith.constant 7 : i32
    %175 = tpu.dynamic_rotate %166 by %c7_i32_172 dim 1 : vector<8x128xf32>, i32 -> vector<8x128xf32>
    %c16_173 = arith.constant 16 : index
    %c0_174 = arith.constant 0 : index
    %176 = vector.load %arg1[%c16_173, %c0_174] : memref<72x128xf32, #tpu.memory_space<vmem>>, vector<8x128xf32>
    %177 = arith.mulf %175, %176 : vector<8x128xf32>
    %c16_175 = arith.constant 16 : index
    %c0_176 = arith.constant 0 : index
    %178 = vector.load %arg5[%c16_175, %c0_176] : memref<72x128xf32, #tpu.memory_space<vmem>>, vector<8x128xf32>
    tpu.vector_store %arg5[%c16_175, %c0_176], %177 {strides = array<i32>} : memref<72x128xf32, #tpu.memory_space<vmem>>, vector<8x128xf32>,
    %c1_i32_177 = arith.constant 1 : i32
    %179 = tpu.dynamic_rotate %166 by %c1_i32_177 dim 1 : vector<8x128xf32>, i32 -> vector<8x128xf32>
    %c24_178 = arith.constant 24 : index
    %c0_179 = arith.constant 0 : index
    %180 = vector.load %arg1[%c24_178, %c0_179] : memref<72x128xf32, #tpu.memory_space<vmem>>, vector<8x128xf32>
    %181 = arith.mulf %179, %180 : vector<8x128xf32>
    %c24_180 = arith.constant 24 : index
    %c0_181 = arith.constant 0 : index
    %182 = vector.load %arg5[%c24_180, %c0_181] : memref<72x128xf32, #tpu.memory_space<vmem>>, vector<8x128xf32>
    tpu.vector_store %arg5[%c24_180, %c0_181], %181 {strides = array<i32>} : memref<72x128xf32, #tpu.memory_space<vmem>>, vector<8x128xf32>,
    %c32_182 = arith.constant 32 : index
    %c0_183 = arith.constant 0 : index
    %183 = vector.load %arg5[%c32_182, %c0_183] : memref<72x128xf32, #tpu.memory_space<vmem>>, vector<8x128xf32>
    tpu.vector_store %arg5[%c32_182, %c0_183], %166 {strides = array<i32>} : memref<72x128xf32, #tpu.memory_space<vmem>>, vector<8x128xf32>,
    %c127_i32_184 = arith.constant 127 : i32
    %184 = tpu.dynamic_rotate %166 by %c127_i32_184 dim 1 : vector<8x128xf32>, i32 -> vector<8x128xf32>
    %c40_185 = arith.constant 40 : index
    %c0_186 = arith.constant 0 : index
    %185 = vector.load %arg1[%c40_185, %c0_186] : memref<72x128xf32, #tpu.memory_space<vmem>>, vector<8x128xf32>
    %186 = arith.mulf %184, %185 : vector<8x128xf32>
    %c40_187 = arith.constant 40 : index
    %c0_188 = arith.constant 0 : index
    %187 = vector.load %arg5[%c40_187, %c0_188] : memref<72x128xf32, #tpu.memory_space<vmem>>, vector<8x128xf32>
    tpu.vector_store %arg5[%c40_187, %c0_188], %186 {strides = array<i32>} : memref<72x128xf32, #tpu.memory_space<vmem>>, vector<8x128xf32>,
    %c121_i32_189 = arith.constant 121 : i32
    %188 = tpu.dynamic_rotate %166 by %c121_i32_189 dim 1 : vector<8x128xf32>, i32 -> vector<8x128xf32>
    %c48_190 = arith.constant 48 : index
    %c0_191 = arith.constant 0 : index
    %189 = vector.load %arg1[%c48_190, %c0_191] : memref<72x128xf32, #tpu.memory_space<vmem>>, vector<8x128xf32>
    %190 = arith.mulf %188, %189 : vector<8x128xf32>
    %c48_192 = arith.constant 48 : index
    %c0_193 = arith.constant 0 : index
    %191 = vector.load %arg5[%c48_192, %c0_193] : memref<72x128xf32, #tpu.memory_space<vmem>>, vector<8x128xf32>
    tpu.vector_store %arg5[%c48_192, %c0_193], %190 {strides = array<i32>} : memref<72x128xf32, #tpu.memory_space<vmem>>, vector<8x128xf32>,
    %c120_i32_194 = arith.constant 120 : i32
    %192 = tpu.dynamic_rotate %166 by %c120_i32_194 dim 1 : vector<8x128xf32>, i32 -> vector<8x128xf32>
    %c56_195 = arith.constant 56 : index
    %c0_196 = arith.constant 0 : index
    %193 = vector.load %arg1[%c56_195, %c0_196] : memref<72x128xf32, #tpu.memory_space<vmem>>, vector<8x128xf32>
    %194 = arith.mulf %192, %193 : vector<8x128xf32>
    %c56_197 = arith.constant 56 : index
    %c0_198 = arith.constant 0 : index
    %195 = vector.load %arg5[%c56_197, %c0_198] : memref<72x128xf32, #tpu.memory_space<vmem>>, vector<8x128xf32>
    tpu.vector_store %arg5[%c56_197, %c0_198], %194 {strides = array<i32>} : memref<72x128xf32, #tpu.memory_space<vmem>>, vector<8x128xf32>,
    %c119_i32_199 = arith.constant 119 : i32
    %196 = tpu.dynamic_rotate %166 by %c119_i32_199 dim 1 : vector<8x128xf32>, i32 -> vector<8x128xf32>
    %c64_200 = arith.constant 64 : index
    %c0_201 = arith.constant 0 : index
    %197 = vector.load %arg1[%c64_200, %c0_201] : memref<72x128xf32, #tpu.memory_space<vmem>>, vector<8x128xf32>
    %198 = arith.mulf %196, %197 : vector<8x128xf32>
    %c64_202 = arith.constant 64 : index
    %c0_203 = arith.constant 0 : index
    %199 = vector.load %arg5[%c64_202, %c0_203] : memref<72x128xf32, #tpu.memory_space<vmem>>, vector<8x128xf32>
    tpu.vector_store %arg5[%c64_202, %c0_203], %198 {strides = array<i32>} : memref<72x128xf32, #tpu.memory_space<vmem>>, vector<8x128xf32>,
    %c48_204 = arith.constant 48 : index
    %c0_205 = arith.constant 0 : index
    %200 = vector.load %arg3[%c48_204, %c0_205] : memref<56x72xf32, #tpu.memory_space<vmem>>, vector<8x72xf32>
    %c0_206 = arith.constant 0 : index
    %c0_207 = arith.constant 0 : index
    %201 = vector.load %arg5[%c0_206, %c0_207] : memref<72x128xf32, #tpu.memory_space<vmem>>, vector<72x128xf32>
    %cst_208 = arith.constant dense<0.000000e+00> : vector<8x128xf32>
    %202 = tpu.matmul %200, %201, %cst_208 {dimension_numbers = #tpu.dot_dimension_numbers<[1], [0], [0], [1], [0, 0, 1, 1], [], []>} : vector<8x72xf32>, vector<72x128xf32>, vector<8x128xf32> -> vector<8x128xf32>
    %c104 = arith.constant 104 : index
    %c0_209 = arith.constant 0 : index
    %203 = vector.load %arg2[%c104, %c0_209] : memref<112x1xf32, #tpu.memory_space<vmem>>, vector<8x1xf32>
    %204 = vector.broadcast %203 : vector<8x1xf32> to vector<8x128xf32>
    %205 = arith.addf %202, %204 : vector<8x128xf32>
    %206 = arith.addf %205, %104 : vector<8x128xf32>
    %c0_210 = arith.constant 0 : index
    %c0_211 = arith.constant 0 : index
    %207 = vector.load %arg4[%c0_210, %c0_211] : memref<8x128xf32, #tpu.memory_space<vmem>>, vector<8x128xf32>
    tpu.vector_store %arg4[%c0_210, %c0_211], %206 {strides = array<i32>} : memref<8x128xf32, #tpu.memory_space<vmem>>, vector<8x128xf32>,
    return
  }
}

</mosaic_0001>

<bundles_post_ra>
// kernel: _forward_impl.2
= control target key start
LH: loop header
LB: loop body
LE: loop exit
PB: predicated region body
PF: predicated region fallthrough
CT: control target
= control target key end

     0   :  { %v1074_v2 = vmov 0   ;;  %v1075_v4 = vmov 0.0   ;;  %vm1076_vm0 = vmmov 0   ;;  %v20_v7 = vlaneseq  ;;  %s1079_s6 = smov 9   ;;  %s1080_s7 = smov 1   ;;  %s1344_s0 = inlined_call_operand.vmem [shape: f32[72,128], index: 0, kind: input, shape index: {}]   ;;  %s1345_s1 = inlined_call_operand.vmem [shape: f32[112,1], index: 1, kind: input, shape index: {}]   ;;  %s1346_s2 = inlined_call_operand.vmem [shape: f32[56,72], index: 2, kind: input, shape index: {}]   ;;  %s1347_s3 = inlined_call_operand.vmem [shape: f32[4,128], index: 3, kind: input, shape index: {}]   ;;  %s1348_s4 = inlined_call_operand.<no memory space> [shape: f32[], index: 4, kind: input, shape index: {}]   ;;  %s1349_s5 = inlined_call_operand.vmem [shape: f32[8,128], index: 5, kind: output, shape index: {}]  }
   0x1   :  { %v10_v0 = vstv %s1348_s4  ;;  %v28_v1 = vld [vmem:[%s1345_s1] sm:$0xff]  ;;  %1072 = vset.pattern.permute.xlu0 %v1074_v2  ;;  %1073 = vset.pattern.permute.xlu1 %v1074_v2  ;;  %v35_v3 = vld [vmem:[%s1345_s1 + $0x8] sm:$0xff]  ;;  %v118_v5 = vld [vmem:[%s1345_s1 + $0x10] sm:$0xff]  ;;  %vm44_vm2 = vcmask 64512   ;;  %v1077_v17 = vmov 0.0|0.0   ;;  %s1081_s8 = smov 7  }
   0x2   :  { %31 = vperm.xlu0 %1072, %v28_v1   ;;  %910 = vmatprep.subr.mxu0 %v1075_v4  ;;  %v125_v6 = vld [vmem:[%s1345_s1 + $0x18] sm:$0xff]  ;;  %v21_v8 = vshrl.u32 %v20_v7, 7  ;;  %v19_v9 = vld [vmem:[%s1347_s3] sm:$0xf]  ;;  %s1078_s3 = smov 8   ;;  %s1082_s9 = smov 121  }
   0x3   :  { %912 = vmatprep.mubr.msk.f32.mxu0 %vm1076_vm0, %v1075_v4  ;;  %933 = vmatprep.mubr.msk.f32.mxu1 %vm1076_vm0, %v1075_v4  ;;  %v43_v16 = vld [vmem:[%s1346_s2] sm:$0xff]  ;;  %s1083_s10 = smov 127   ;;  %s1084_s11 = smov 119   ;;  %v265_v25 = vld [vmem:[%s1345_s1 + $0x28] sm:$0xff]  ;;  %v1179_v33 = vld [vmem:[%s1344_s0 + $0x18] sm:$0xff]  ;;  %vm184_vm3 = vcmask 588800  }
   0x4   :  { %121 = vperm.xlu1 %1073, %v118_v5   ;;  %vm23_vm1 = vcmp.lt.s32.totalorder %v21_v8, 4  ;;  %1009 = vmatprep.subr.bf16.mxu1 %v1077_v17  ;;  %s1085_s12 = smov 120   ;;  %v258_v26 = vld [vmem:[%s1345_s1 + $0x20] sm:$0xff]  ;;  %v1167_v27 = vld [vmem:[%s1344_s0 + $0x8] sm:$0xff]  ;;  %v1184_v34 = vld [vmem:[%s1344_s0 + $0x10] sm:$0xff] }
   0x5   :  { %v1139_v11 = vsel %vm23_vm1, %v19_v9, %v10_v0  ;;  %v1172_v28 = vld [vmem:[%s1344_s0] sm:$0xff]  ;;  %v1192_v40 = vld [vmem:[%s1344_s0 + $0x28] sm:$0xff]  ;;  %v1198_v44 = vld [vmem:[%s1344_s0 + $0x30] sm:$0xff] }
   0x6   :  { %38 = vperm.xlu0 %1072, %v35_v3   ;;  %v1204_v46 = vld [vmem:[%s1344_s0 + $0x38] sm:$0xff]  ;;  %v1212_v52 = vld [vmem:[%s1344_s0 + $0x40] sm:$0xff]  ;;  %v174_v55 = vld [vmem:[%s1346_s2 + $0x8] sm:$0xff] }
   0x7   :  { %v478_v63 = vld [vmem:[%s1345_s1 + $0x38] sm:$0xff]  ;;  %v324_v0 = vld [vmem:[%s1345_s1 + $0x30] sm:$0xff]  ;;  %v567_v1 = vld [vmem:[%s1345_s1 + $0x48] sm:$0xff] }
   0x8   :  { %128 = vperm.xlu1 %1073, %v125_v6   ;;  %v485_v2 = vld [vmem:[%s1345_s1 + $0x40] sm:$0xff]  ;;  %v574_v3 = vld [vmem:[%s1345_s1 + $0x50] sm:$0xff] }
  0x81   :  { %v32_v10 = vpop.permute.xlu0 %31 }
  0x82   :  { %v34_v12 = vmul.f32 %v32_v10, %v1139_v11 }
  0x83   :  { %v122_v18 = vpop.permute.xlu1 %121 }
  0x85   :  { %v39_v13 = vpop.permute.xlu0 %38 }
  0x86   :  { %v41_v14 = vadd.f32 %v39_v13, %v34_v12 }
  0x87   :  { %v129_v22 = vpop.permute.xlu1 %128 }
  0x88   :  { %v42_v15 = vmax.f32 %v41_v14, 0.0 }
  0x8a   :  { %911 = vmatpush3.msra.mxu0 %v42_v15 }
  0x8b   :  { %913 = vmatmul.mubr.msk.f32.vlgmr.msra.gmra.mrb[0].mxu0 %vm44_vm2, %v43_v16  ;;  %1021 = vmatprep.subr.bf16.mxu0 %v1077_v17 }
  0x8c   :  { %954 = vmatprep.mubr.msk.f32.mxu0 %vm1076_vm0, %v1075_v4 }
 0x15e   :  { %v114_v19 = vpop.f32.mrb[0].mxu0 }
 0x15f   :  { %v124_v20 = vmul.f32 %v122_v18, %v114_v19  ;;  %v914_v21 = vpop.f32.mrb[1].mxu0 }
 0x161   :  { %v131_v23 = vadd.f32 %v129_v22, %v124_v20 }
 0x163   :  { %v132_v24 = vmax.f32 %v131_v23, 0.0 }
 0x165   :  { %138 = vrot.lane.b32.xlu1 %v132_v24, %s1078_s3  ;;  %133 = vrot.lane.b32.xlu0 %v132_v24, %s1079_s6 }
 0x169   :  { %148 = vrot.lane.b32.xlu1 %v132_v24, %s1080_s7  ;;  %143 = vrot.lane.b32.xlu0 %v132_v24, %s1081_s8 }
 0x16d   :  { %159 = vrot.lane.b32.xlu1 %v132_v24, %s1082_s9  ;;  %154 = vrot.lane.b32.xlu0 %v132_v24, %s1083_s10 }
 0x171   :  { %169 = vrot.lane.b32.xlu1 %v132_v24, %s1084_s11  ;;  %164 = vrot.lane.b32.xlu0 %v132_v24, %s1085_s12 }
 0x175   :  { %268 = vperm.xlu1 %1073, %v265_v25   ;;  %261 = vperm.xlu0 %1072, %v258_v26  }
 0x1d7   :  { %v139_v29 = vpop.permute.xlu1 %138  ;;  %v134_v30 = vpop.permute.xlu0 %133 }
 0x1d8   :  { %v141_v31 = vmul.f32 %v1167_v27, %v139_v29  ;;  %v136_v32 = vmul.f32 %v1172_v28, %v134_v30  ;;  %v314_v29 = vld [vmem:[%s1346_s2 + $0x10] sm:$0xff]  ;;  %v403_v30 = vld [vmem:[%s1346_s2 + $0x18] sm:$0xff] }
 0x1da   :  { %v1010_v35 = vpack.c.bf16 %v141_v31, %v136_v32 }
 0x1db   :  { %v149_v36 = vpop.permute.xlu1 %148  ;;  %v144_v37 = vpop.permute.xlu0 %143 }
 0x1dc   :  { %v151_v38 = vmul.f32 %v1179_v33, %v149_v36  ;;  %v146_v39 = vmul.f32 %v1184_v34, %v144_v37  ;;  %1011 = vmatpush3.bf16.msra.mxu1 %v1010_v35 }
 0x1dd   :  { %1012 = vmatprep.subr.bf16.mxu1 %v1077_v17 }
 0x1de   :  { %v1013_v41 = vpack.c.bf16 %v151_v38, %v146_v39 }
 0x1df   :  { %v155_v42 = vpop.permute.xlu0 %154  ;;  %v160_v45 = vpop.permute.xlu1 %159 }
 0x1e0   :  { %v157_v43 = vmul.f32 %v1192_v40, %v155_v42  ;;  %1014 = vmatpush3.bf16.msra.mxu1 %v1013_v41  ;;  %v162_v49 = vmul.f32 %v1198_v44, %v160_v45  ;;  %v493_v42 = vld [vmem:[%s1346_s2 + $0x20] sm:$0xff] }
 0x1e1   :  { %1015 = vmatprep.subr.bf16.mxu1 %v1077_v17 }
 0x1e2   :  { %v1016_v47 = vpack.c.bf16 %v157_v43, %v132_v24 }
 0x1e3   :  { %v165_v48 = vpop.permute.xlu0 %164  ;;  %v170_v53 = vpop.permute.xlu1 %169 }
 0x1e4   :  { %v167_v50 = vmul.f32 %v1204_v46, %v165_v48  ;;  %1017 = vmatpush3.bf16.msra.mxu1 %v1016_v47  ;;  %v172_v54 = vmul.f32 %v1212_v52, %v170_v53  ;;  %v713_v53 = vld [vmem:[%s1345_s1 + $0x60] sm:$0xff] }
 0x1e5   :  { %1018 = vmatprep.subr.bf16.mxu1 %v1077_v17 }
 0x1e6   :  { %v1019_v51 = vpack.c.bf16 %v167_v50, %v162_v49 }
 0x1e8   :  { %1020 = vmatpush3.bf16.msra.mxu1 %v1019_v51 }
 0x1e9   :  { %931 = vmatprep.subr.mxu1 %v1075_v4 }
 0x1ec   :  { %932 = vmatpush3.msra.mxu1 %v172_v54  ;;  %v706_v54 = vld [vmem:[%s1345_s1 + $0x58] sm:$0xff] }
 0x1ed   :  { %934 = vmatmul.mubr.msk.f32.vlgmr.msra.gmra.mrb[0].mxu1 %vm184_vm3, %v174_v55  ;;  %962 = vmatprep.subr.mxu1 %v1075_v4 }
 0x1ee   :  { %964 = vmatprep.mubr.msk.f32.mxu1 %vm1076_vm0, %v1075_v4 }
 0x1f4   :  { %v262_v56 = vpop.permute.xlu0 %261  ;;  %v269_v60 = vpop.permute.xlu1 %268 }
 0x2c0   :  { %v254_v57 = vpop.f32.mrb[0].mxu1 }
 0x2c1   :  { %v264_v58 = vmul.f32 %v262_v56, %v254_v57  ;;  %v935_v59 = vpop.f32.mrb[1].mxu1 }
 0x2c3   :  { %v271_v61 = vadd.f32 %v269_v60, %v264_v58 }
 0x2c5   :  { %v272_v62 = vmax.f32 %v271_v61, 0.0 }
 0x2c7   :  { %278 = vrot.lane.b32.xlu1 %v272_v62, %s1078_s3  ;;  %273 = vrot.lane.b32.xlu0 %v272_v62, %s1079_s6 }
 0x2cb   :  { %288 = vrot.lane.b32.xlu1 %v272_v62, %s1080_s7  ;;  %283 = vrot.lane.b32.xlu0 %v272_v62, %s1081_s8 }
 0x2cf   :  { %299 = vrot.lane.b32.xlu1 %v272_v62, %s1082_s9  ;;  %294 = vrot.lane.b32.xlu0 %v272_v62, %s1083_s10 }
 0x2d3   :  { %309 = vrot.lane.b32.xlu1 %v272_v62, %s1084_s11  ;;  %304 = vrot.lane.b32.xlu0 %v272_v62, %s1085_s12 }
 0x2d7   :  { %481 = vperm.xlu1 %1073, %v478_v63   ;;  %327 = vperm.xlu0 %1072, %v324_v0  }
 0x2db   :  { %570 = vperm.xlu1 %1073, %v567_v1   ;;  %488 = vperm.xlu0 %1072, %v485_v2  }
 0x2df   :  { %577 = vperm.xlu0 %1072, %v574_v3  }
 0x339   :  { %v279_v5 = vpop.permute.xlu1 %278  ;;  %v274_v6 = vpop.permute.xlu0 %273 }
 0x33a   :  { %v281_v7 = vmul.f32 %v279_v5, %v1167_v27  ;;  %v276_v8 = vmul.f32 %v274_v6, %v1172_v28 }
 0x33c   :  { %v1022_v9 = vpack.c.bf16 %v281_v7, %v276_v8 }
 0x33d   :  { %v289_v10 = vpop.permute.xlu1 %288  ;;  %v284_v12 = vpop.permute.xlu0 %283 }
 0x33e   :  { %v291_v13 = vmul.f32 %v289_v10, %v1179_v33  ;;  %v286_v14 = vmul.f32 %v284_v12, %v1184_v34  ;;  %1023 = vmatpush3.bf16.msra.mxu0 %v1022_v9 }
 0x33f   :  { %1024 = vmatprep.subr.bf16.mxu0 %v1077_v17 }
 0x340   :  { %v1025_v15 = vpack.c.bf16 %v291_v13, %v286_v14  ;;  %v623_v13 = vld [vmem:[%s1346_s2 + $0x28] sm:$0xff] }
 0x341   :  { %v295_v16 = vpop.permute.xlu0 %294  ;;  %v300_v19 = vpop.permute.xlu1 %299 }
 0x342   :  { %v297_v18 = vmul.f32 %v295_v16, %v1192_v40  ;;  %1026 = vmatpush3.bf16.msra.mxu0 %v1025_v15  ;;  %v302_v22 = vmul.f32 %v300_v19, %v1198_v44 }
 0x343   :  { %1027 = vmatprep.subr.bf16.mxu0 %v1077_v17 }
 0x344   :  { %v1028_v20 = vpack.c.bf16 %v297_v18, %v272_v62 }
 0x345   :  { %v305_v21 = vpop.permute.xlu0 %304  ;;  %v310_v25 = vpop.permute.xlu1 %309 }
 0x346   :  { %v307_v23 = vmul.f32 %v305_v21, %v1204_v46  ;;  %1029 = vmatpush3.bf16.msra.mxu0 %v1028_v20  ;;  %v312_v26 = vmul.f32 %v310_v25, %v1212_v52 }
 0x347   :  { %1030 = vmatprep.subr.bf16.mxu0 %v1077_v17 }
 0x348   :  { %v1031_v24 = vpack.c.bf16 %v307_v23, %v302_v22  ;;  %v772_v22 = vld [vmem:[%s1345_s1 + $0x68] sm:$0xff] }
 0x34a   :  { %1032 = vmatpush3.bf16.msra.mxu0 %v1031_v24 }
 0x34b   :  { %952 = vmatprep.subr.mxu0 %v1075_v4 }
 0x34e   :  { %953 = vmatpush3.msra.mxu0 %v312_v26 }
 0x34f   :  { %955 = vmatmul.mubr.msk.f32.vlgmr.msra.gmra.mrb[2].mxu0 %vm184_vm3, %v314_v29  ;;  %957 = vmatprep.subr.mxu0 %v1075_v4 }
 0x350   :  { %958 = vmatpush3.msra.mxu0 %v1139_v11  ;;  %959 = vmatprep.mubr.msk.f32.mxu0 %vm1076_vm0, %v1075_v4 }
 0x351   :  { %1045 = vmatprep.subr.bf16.mxu0 %v1077_v17 }
 0x356   :  { %v328_v31 = vpop.permute.xlu0 %327  ;;  %v482_v11 = vpop.permute.xlu1 %481 }
 0x357   :  { %960 = vmatmul.mubr.msk.f32.vlgmr.msra.gmra.mrb[2].mxu0 %vm44_vm2, %v403_v30 }
 0x358   :  { %1006 = vmatprep.mubr.msk.f32.mxu0 %vm1076_vm0, %v1075_v4 }
 0x35a   :  { %v489_v38 = vpop.permute.xlu0 %488  ;;  %v571_v43 = vpop.permute.xlu1 %570 }
 0x35e   :  { %v578_v49 = vpop.permute.xlu0 %577 }
 0x42a   :  { %v473_v32 = vpop.f32.mrb[2].mxu0 }
 0x42b   :  { %v1273_v35 = vadd.f32 %v473_v32, %v328_v31  ;;  %v961_v36 = vpop.f32.mrb[3].mxu0 }
 0x42d   :  { %v484_v37 = vmul.f32 %v1273_v35, %v482_v11 }
 0x42f   :  { %v491_v39 = vadd.f32 %v489_v38, %v484_v37 }
 0x431   :  { %v492_v41 = vmax.f32 %v491_v39, 0.0 }
 0x433   :  { %963 = vmatpush3.msra.mxu1 %v492_v41 }
 0x434   :  { %965 = vmatmul.mubr.msk.f32.vlgmr.msra.gmra.mrb[2].mxu1 %vm44_vm2, %v493_v42  ;;  %1033 = vmatprep.subr.bf16.mxu1 %v1077_v17 }
 0x435   :  { %985 = vmatprep.mubr.msk.f32.mxu1 %vm1076_vm0, %v1075_v4 }
 0x507   :  { %v563_v45 = vpop.f32.mrb[2].mxu1 }
 0x508   :  { %v573_v47 = vmul.f32 %v571_v43, %v563_v45  ;;  %v966_v48 = vpop.f32.mrb[3].mxu1  ;;  %v762_v43 = vld [vmem:[%s1346_s2 + $0x30] sm:$0xff] }
 0x50a   :  { %v580_v50 = vadd.f32 %v578_v49, %v573_v47 }
 0x50c   :  { %v581_v51 = vmax.f32 %v580_v50, 0.0 }
 0x50e   :  { %587 = vrot.lane.b32.xlu0 %v581_v51, %s1078_s3  ;;  %582 = vrot.lane.b32.xlu1 %v581_v51, %s1079_s6 }
 0x512   :  { %597 = vrot.lane.b32.xlu0 %v581_v51, %s1080_s7  ;;  %592 = vrot.lane.b32.xlu1 %v581_v51, %s1081_s8 }
 0x516   :  { %608 = vrot.lane.b32.xlu0 %v581_v51, %s1082_s9  ;;  %603 = vrot.lane.b32.xlu1 %v581_v51, %s1083_s10 }
 0x51a   :  { %618 = vrot.lane.b32.xlu0 %v581_v51, %s1084_s11  ;;  %613 = vrot.lane.b32.xlu1 %v581_v51, %s1085_s12 }
 0x51e   :  { %716 = vperm.xlu0 %1072, %v713_v53   ;;  %709 = vperm.xlu1 %1073, %v706_v54  }
 0x580   :  { %v588_v55 = vpop.permute.xlu0 %587  ;;  %v583_v56 = vpop.permute.xlu1 %582 }
 0x581   :  { %v590_v57 = vmul.f32 %v588_v55, %v1167_v27  ;;  %v585_v58 = vmul.f32 %v583_v56, %v1172_v28 }
 0x583   :  { %v1034_v59 = vpack.c.bf16 %v590_v57, %v585_v58 }
 0x584   :  { %v598_v60 = vpop.permute.xlu0 %597  ;;  %v593_v61 = vpop.permute.xlu1 %592 }
 0x585   :  { %v600_v62 = vmul.f32 %v598_v60, %v1179_v33  ;;  %v595_v63 = vmul.f32 %v593_v61, %v1184_v34  ;;  %1035 = vmatpush3.bf16.msra.mxu1 %v1034_v59 }
 0x586   :  { %1036 = vmatprep.subr.bf16.mxu1 %v1077_v17 }
 0x587   :  { %v1037_v0 = vpack.c.bf16 %v600_v62, %v595_v63 }
 0x588   :  { %v604_v1 = vpop.permute.xlu1 %603  ;;  %v609_v3 = vpop.permute.xlu0 %608 }
 0x589   :  { %v606_v2 = vmul.f32 %v604_v1, %v1192_v40  ;;  %1038 = vmatpush3.bf16.msra.mxu1 %v1037_v0  ;;  %v611_v7 = vmul.f32 %v609_v3, %v1198_v44 }
 0x58a   :  { %1039 = vmatprep.subr.bf16.mxu1 %v1077_v17 }
 0x58b   :  { %v1040_v5 = vpack.c.bf16 %v606_v2, %v581_v51 }
 0x58c   :  { %v614_v6 = vpop.permute.xlu1 %613  ;;  %v619_v10 = vpop.permute.xlu0 %618 }
 0x58d   :  { %v616_v8 = vmul.f32 %v614_v6, %v1204_v46  ;;  %1041 = vmatpush3.bf16.msra.mxu1 %v1040_v5  ;;  %v621_v12 = vmul.f32 %v619_v10, %v1212_v52 }
 0x58e   :  { %1042 = vmatprep.subr.bf16.mxu1 %v1077_v17 }
 0x58f   :  { %v1043_v9 = vpack.c.bf16 %v616_v8, %v611_v7 }
 0x591   :  { %1044 = vmatpush3.bf16.msra.mxu1 %v1043_v9 }
 0x592   :  { %983 = vmatprep.subr.mxu1 %v1075_v4 }
 0x595   :  { %984 = vmatpush3.msra.mxu1 %v621_v12 }
 0x596   :  { %986 = vmatmul.mubr.msk.f32.vlgmr.msra.gmra.mrb[4].mxu1 %vm184_vm3, %v623_v13 }
 0x59d   :  { %v710_v14 = vpop.permute.xlu1 %709  ;;  %v717_v19 = vpop.permute.xlu0 %716 }
 0x669   :  { %v702_v15 = vpop.f32.mrb[4].mxu1 }
 0x66a   :  { %v712_v16 = vmul.f32 %v710_v14, %v702_v15  ;;  %v987_v18 = vpop.f32.mrb[5].mxu1 }
 0x66c   :  { %v719_v20 = vadd.f32 %v717_v19, %v712_v16 }
 0x66e   :  { %v720_v21 = vmax.f32 %v719_v20, 0.0 }
 0x670   :  { %726 = vrot.lane.b32.xlu0 %v720_v21, %s1078_s3  ;;  %721 = vrot.lane.b32.xlu1 %v720_v21, %s1079_s6 }
 0x674   :  { %736 = vrot.lane.b32.xlu0 %v720_v21, %s1080_s7  ;;  %731 = vrot.lane.b32.xlu1 %v720_v21, %s1081_s8 }
 0x678   :  { %747 = vrot.lane.b32.xlu0 %v720_v21, %s1082_s9  ;;  %742 = vrot.lane.b32.xlu1 %v720_v21, %s1083_s10 }
 0x67c   :  { %757 = vrot.lane.b32.xlu0 %v720_v21, %s1084_s11  ;;  %752 = vrot.lane.b32.xlu1 %v720_v21, %s1085_s12 }
 0x680   :  { %775 = vperm.xlu1 %1073, %v772_v22  }
 0x6e2   :  { %v727_v23 = vpop.permute.xlu0 %726  ;;  %v722_v24 = vpop.permute.xlu1 %721 }
 0x6e3   :  { %v729_v25 = vmul.f32 %v727_v23, %v1167_v27  ;;  %v724_v26 = vmul.f32 %v722_v24, %v1172_v28 }
 0x6e5   :  { %v1046_v29 = vpack.c.bf16 %v729_v25, %v724_v26 }
 0x6e6   :  { %v737_v30 = vpop.permute.xlu0 %736  ;;  %v732_v31 = vpop.permute.xlu1 %731 }
 0x6e7   :  { %v739_v32 = vmul.f32 %v737_v30, %v1179_v33  ;;  %v734_v36 = vmul.f32 %v732_v31, %v1184_v34  ;;  %1047 = vmatpush3.bf16.msra.mxu0 %v1046_v29 }
 0x6e8   :  { %1048 = vmatprep.subr.bf16.mxu0 %v1077_v17 }
 0x6e9   :  { %v1049_v11 = vpack.c.bf16 %v739_v32, %v734_v36 }
 0x6ea   :  { %v743_v37 = vpop.permute.xlu1 %742  ;;  %v748_v39 = vpop.permute.xlu0 %747 }
 0x6eb   :  { %v745_v38 = vmul.f32 %v743_v37, %v1192_v40  ;;  %1050 = vmatpush3.bf16.msra.mxu0 %v1049_v11  ;;  %v750_v41 = vmul.f32 %v748_v39, %v1198_v44 }
 0x6ec   :  { %1051 = vmatprep.subr.bf16.mxu0 %v1077_v17 }
 0x6ed   :  { %v1052_v27 = vpack.c.bf16 %v745_v38, %v720_v21 }
 0x6ee   :  { %v753_v28 = vpop.permute.xlu1 %752  ;;  %v758_v34 = vpop.permute.xlu0 %757 }
 0x6ef   :  { %v755_v42 = vmul.f32 %v753_v28, %v1204_v46  ;;  %1053 = vmatpush3.bf16.msra.mxu0 %v1052_v27  ;;  %v760_v40 = vmul.f32 %v758_v34, %v1212_v52 }
 0x6f0   :  { %1054 = vmatprep.subr.bf16.mxu0 %v1077_v17 }
 0x6f1   :  { %v1055_v33 = vpack.c.bf16 %v755_v42, %v750_v41 }
 0x6f3   :  { %1056 = vmatpush3.bf16.msra.mxu0 %v1055_v33 }
 0x6f4   :  { %1004 = vmatprep.subr.mxu0 %v1075_v4 }
 0x6f7   :  { %1005 = vmatpush3.msra.mxu0 %v760_v40 }
 0x6f8   :  { %1007 = vmatmul.mubr.msk.f32.vlgmr.msra.gmra.mrb[4].mxu0 %vm184_vm3, %v762_v43 }
 0x6ff   :  { %v776_v44 = vpop.permute.xlu1 %775 }
 0x7cb   :  { %v847_v45 = vpop.f32.mrb[4].mxu0 }
 0x7cc   :  { %v848_v46 = vadd.f32 %v847_v45, %v776_v44  ;;  %v1008_v47 = vpop.f32.mrb[5].mxu0 }
 0x7ce   :  { %v851_v17 = vadd.f32 %v1273_v35, %v848_v46 }
 0x7d0   :  { %852 = vst [vmem:[%s1349_s5] sm:$0xff] %v851_v17 }

</bundles_post_ra>
